<compile_context>
chip_gen: v5e
topology: v5e:2x2
jax: 0.10.0
libtpu: 0.0.40
codegen_flags: <defaults>
</compile_context>

<pallas_src>
import functools
import math

import jax
import jax.numpy as jnp
from jax import lax
from jax.experimental import pallas as pl
from jax.experimental.pallas import tpu as pltpu


# ----------------------------- kernel helpers ------------------------------

def _gelu(x, use_tanh=False):
    if use_tanh:
        # tanh approximation -> transcendental lands on the EUP slot.
        # Slightly different numerics than torch.nn.GELU(); off by default.
        return jax.nn.gelu(x, approximate=True)
    # Exact erf form, matching torch.nn.GELU() default semantics.
    return 0.5 * x * (1.0 + lax.erf(x * (1.0 / math.sqrt(2.0))))


def _layer_norm_mxu(x, p_avg, gamma, beta, eps=1e-5):
    """LayerNorm whose lane reductions run on the MXU.

    p_avg is an averaging projection: ones(D,D)/D for a full LayerNorm, or
    blockdiag(ones(w0,w0)/w0, ones(w1,w1)/w1) for two independent LayerNorms
    applied to the two lane segments of a packed vector.  x @ p_avg broadcasts
    the per-row (per-segment) mean to every lane of that (segment of the) row,
    so no cross-lane XLU reduction is needed.
    """
    mean = jnp.dot(x, p_avg, preferred_element_type=jnp.float32)
    c = x - mean
    var = jnp.dot(c * c, p_avg, preferred_element_type=jnp.float32)
    return c * lax.rsqrt(var + eps) * gamma + beta


# ------------------------------- the kernel --------------------------------

def mlp_q_kernel(x_ref,
                 wa_ref, wb_ref,            # fused stage 1/2: blockdiag(W1,W3), blockdiag(W2,W4)
                 w5_ref, w6_ref, w7_ref,    # output_mlp Linear weights
                 pa_ref, p5_ref, p6_ref,    # LayerNorm averaging projections (MXU reductions)
                 vec_ref,                   # packed (16, vec_width) biases / LN gammas / betas
                 out_ref, *, packed_w, use_tanh_gelu):
    gelu = functools.partial(_gelu, use_tanh=use_tanh_gelu)

    # Packed 1-D params, one row each (static slices of the VMEM ref).
    ba, ga, bta = (vec_ref[0:1, :packed_w], vec_ref[1:2, :packed_w],
                   vec_ref[2:3, :packed_w])
    bb, gb, btb = (vec_ref[3:4, :packed_w], vec_ref[4:5, :packed_w],
                   vec_ref[5:6, :packed_w])
    b5, g5, bt5 = vec_ref[6:7, :128], vec_ref[7:8, :128], vec_ref[8:9, :128]
    b6, g6, bt6 = vec_ref[9:10, :32], vec_ref[10:11, :32], vec_ref[11:12, :32]
    b7 = vec_ref[12:13, 0:1]

    x = x_ref[...]                                   # (block_b, state_dim + z_dim)
    pa = pa_ref[...]

    # Fused state_mlp + latent_mlp: [s|z] @ blockdiag(W1,W3) = [s@W1 | z@W3].
    # The segmented LayerNorm (independent LN of the h_dim and z_embed lane
    # ranges) is done by the block-diagonal averaging matrix pa on the MXU.
    h = jnp.dot(x, wa_ref[...], preferred_element_type=jnp.float32) + ba
    h = gelu(_layer_norm_mxu(h, pa, ga, bta))
    h = jnp.dot(h, wb_ref[...], preferred_element_type=jnp.float32) + bb
    h = gelu(_layer_norm_mxu(h, pa, gb, btb))        # == cat([state_embed, z_embed], dim=1)

    # output_mlp
    o = jnp.dot(h, w5_ref[...], preferred_element_type=jnp.float32) + b5
    o = gelu(_layer_norm_mxu(o, p5_ref[...], g5, bt5))
    o = jnp.dot(o, w6_ref[...], preferred_element_type=jnp.float32) + b6
    o = gelu(_layer_norm_mxu(o, p6_ref[...], g6, bt6))

    # Final Linear(32, 1) on the MXU (idle anyway; avoids an XLU lane reduce).
    q = jnp.dot(o, w7_ref[...], preferred_element_type=jnp.float32) + b7
    out_ref[...] = q.astype(out_ref.dtype)


# ------------------------------ python wrapper ------------------------------

def _pick_block_b(B):
    # >= 2 grid steps so both v7x TensorCores get work (no-op on v5e/v6e);
    # cap the tile at 1024 rows (sweep 512-2048 for real workloads); keep it a
    # multiple of 8 for sublane tiling.
    if B <= 8:
        return 8
    tile = min(1024, -(-B // 2))
    return max(8, (tile // 8) * 8)


def mlp_q_forward(s, z, kernel_params, *, h_dim, z_embed, block_b=None,
                  use_tanh_gelu=False):
    B = s.shape[0]
    packed_w = h_dim + z_embed

    # Layout plumbing only: pack [s | z] so the fused block-diagonal stage-1
    # weight sees a single input.
    x = jnp.concatenate([s, z], axis=1)
    in_dim = x.shape[1]

    if block_b is None:
        block_b = _pick_block_b(B)
    n_blocks = -(-B // block_b)
    Bp = n_blocks * block_b
    if Bp != B:                                    # pad instead of asserting
        x = jnp.pad(x, ((0, Bp - B), (0, 0)))

    x_spec = pl.BlockSpec((block_b, in_dim), lambda i: (i, 0))
    param_specs = [pl.BlockSpec(p.shape, lambda i: (0, 0)) for p in kernel_params]
    # TODO(synk): a lane-dense (1, block_b) output row would avoid masked
    # partial stores, but producing it needs an in-kernel transpose of the
    # (block_b, 1) column; kept as a column since the kernel is compute-bound.
    out_spec = pl.BlockSpec((block_b, 1), lambda i: (i, 0))

    kernel = functools.partial(mlp_q_kernel, packed_w=packed_w,
                               use_tanh_gelu=use_tanh_gelu)

    out = pl.pallas_call(
        kernel,
        out_shape=jax.ShapeDtypeStruct((Bp, 1), jnp.float32),
        grid_spec=pltpu.PrefetchScalarGridSpec(
            num_scalar_prefetch=0,
            grid=(n_blocks,),
            in_specs=[x_spec] + param_specs,
            out_specs=out_spec,
        ),
        compiler_params=pltpu.CompilerParams(
            dimension_semantics=("parallel",),
            # Large batch tiles: stay safe on v5e's 16 MiB default scoped VMEM.
            vmem_limit_bytes=32 * 1024 * 1024,
        ),
    )(x, *kernel_params)
    return out[:B]


# --------------------------- deterministic params ---------------------------

def init_params(key, state_dim, z_dim, h_dim):
    """Returns (ref_params, kernel_params).

    ref_params mirror the PyTorch module structure (for the pure-JAX
    reference).  kernel_params are the fused/packed arrays fed to the kernel.
    Linear init mimics PyTorch default (uniform +/- 1/sqrt(fan_in));
    LayerNorm: gamma=1, beta=0.  1-D params stored as (1, dim).
    """
    z_embed = h_dim // 2
    packed_w = h_dim + z_embed

    def linear(key, fin, fout):
        kw, kb = jax.random.split(key)
        lim = 1.0 / math.sqrt(fin)
        w = jax.random.uniform(kw, (fin, fout), jnp.float32, -lim, lim)
        b = jax.random.uniform(kb, (1, fout), jnp.float32, -lim, lim)
        return w, b

    def ln(dim):
        return jnp.ones((1, dim), jnp.float32), jnp.zeros((1, dim), jnp.float32)

    keys = jax.random.split(key, 7)
    # state_mlp
    w1, b1 = linear(keys[0], state_dim, h_dim); g1, bt1 = ln(h_dim)
    w2, b2 = linear(keys[1], h_dim, h_dim);     g2, bt2 = ln(h_dim)
    # latent_mlp
    w3, b3 = linear(keys[2], z_dim, z_embed);   g3, bt3 = ln(z_embed)
    w4, b4 = linear(keys[3], z_embed, z_embed); g4, bt4 = ln(z_embed)
    # output_mlp
    w5, b5 = linear(keys[4], packed_w, 128);    g5, bt5 = ln(128)
    w6, b6 = linear(keys[5], 128, 32);          g6, bt6 = ln(32)
    w7, b7 = linear(keys[6], 32, 1)

    ref_params = [w1, b1, g1, bt1, w2, b2, g2, bt2,
                  w3, b3, g3, bt3, w4, b4, g4, bt4,
                  w5, b5, g5, bt5, w6, b6, g6, bt6, w7, b7]

    def blockdiag(a, c):
        out = jnp.zeros((a.shape[0] + c.shape[0], a.shape[1] + c.shape[1]),
                        jnp.float32)
        out = out.at[:a.shape[0], :a.shape[1]].set(a)
        out = out.at[a.shape[0]:, a.shape[1]:].set(c)
        return out

    # Fused (state | latent) block-diagonal weights.
    wa = blockdiag(w1, w3)                    # (state_dim + z_dim, packed_w)
    wb = blockdiag(w2, w4)                    # (packed_w, packed_w)

    # Averaging projections: LayerNorm lane reductions run on the MXU.
    pa = blockdiag(jnp.full((h_dim, h_dim), 1.0 / h_dim, jnp.float32),
                   jnp.full((z_embed, z_embed), 1.0 / z_embed, jnp.float32))
    p5 = jnp.full((128, 128), 1.0 / 128.0, jnp.float32)
    p6 = jnp.full((32, 32), 1.0 / 32.0, jnp.float32)

    # Pack all 1-D params into one (16, vec_width) array (one row each).
    vec_rows = [jnp.concatenate([b1, b3], axis=1),    # 0: ba
                jnp.concatenate([g1, g3], axis=1),    # 1: ga
                jnp.concatenate([bt1, bt3], axis=1),  # 2: bta
                jnp.concatenate([b2, b4], axis=1),    # 3: bb
                jnp.concatenate([g2, g4], axis=1),    # 4: gb
                jnp.concatenate([bt2, bt4], axis=1),  # 5: btb
                b5, g5, bt5,                          # 6-8
                b6, g6, bt6,                          # 9-11
                b7]                                   # 12
    vec_width = max(packed_w, 128)
    vec = jnp.zeros((16, vec_width), jnp.float32)
    for i, row in enumerate(vec_rows):
        vec = vec.at[i, :row.shape[1]].set(row[0])

    kernel_params = [wa, wb, w5, w6, w7, pa, p5, p6, vec]
    return ref_params, kernel_params


# ---------------------------- pure-JAX reference ----------------------------

def mlp_q_reference(s, z, ref_params):
    (w1, b1, g1, bt1, w2, b2, g2, bt2,
     w3, b3, g3, bt3, w4, b4, g4, bt4,
     w5, b5, g5, bt5, w6, b6, g6, bt6, w7, b7) = ref_params

    def lnf(x, g, b, eps=1e-5):
        mu = x.mean(-1, keepdims=True)
        var = ((x - mu) ** 2).mean(-1, keepdims=True)
        return (x - mu) / jnp.sqrt(var + eps) * g + b

    gelu = functools.partial(jax.nn.gelu, approximate=False)
    se = gelu(lnf(gelu(lnf(s @ w1 + b1, g1, bt1)) @ w2 + b2, g2, bt2))
    ze = gelu(lnf(gelu(lnf(z @ w3 + b3, g3, bt3)) @ w4 + b4, g4, bt4))
    cat = jnp.concatenate([se, ze], axis=1)
    o = gelu(lnf(cat @ w5 + b5, g5, bt5))
    o = gelu(lnf(o @ w6 + b6, g6, bt6))
    return o @ w7 + b7


# ----------------------------------- main -----------------------------------

if __name__ == "__main__":
    state_dim, z_dim, h_dim = 16, 8, 32
    z_embed = h_dim // 2
    batch = 16

    key = jax.random.PRNGKey(0)
    k_s, k_z, k_p = jax.random.split(key, 3)
    s = jax.random.normal(k_s, (batch, state_dim), jnp.float32)
    z = jax.random.normal(k_z, (batch, z_dim), jnp.float32)
    ref_params, kernel_params = init_params(k_p, state_dim, z_dim, h_dim)

    q = mlp_q_forward(s, z, kernel_params, h_dim=h_dim, z_embed=z_embed)
    q = jax.block_until_ready(q)

    # The kernel's f32 MXU matmuls are multi-pass (full f32 precision), so
    # compare against an f32-precision XLA reference.
    with jax.default_matmul_precision("float32"):
        q_ref = jax.block_until_ready(mlp_q_reference(s, z, ref_params))

    assert q.shape == (batch, 1)
    max_err = float(jnp.max(jnp.abs(q - q_ref)))
    assert jnp.allclose(q, q_ref, atol=1e-4, rtol=1e-4), (
        f"mismatch vs reference, max abs err={max_err}")

    print("KERNEL_OK")
</pallas_src>

<mosaic_0001>
module attributes {stable_mosaic.version = 11 : i64} {
  func.func @mlp_q_kernel(%arg0: i32, %arg1: memref<8x24xf32, #tpu.memory_space<vmem>>, %arg2: memref<24x48xf32, #tpu.memory_space<vmem>>, %arg3: memref<48x48xf32, #tpu.memory_space<vmem>>, %arg4: memref<48x128xf32, #tpu.memory_space<vmem>>, %arg5: memref<128x32xf32, #tpu.memory_space<vmem>>, %arg6: memref<32x1xf32, #tpu.memory_space<vmem>>, %arg7: memref<48x48xf32, #tpu.memory_space<vmem>>, %arg8: memref<128x128xf32, #tpu.memory_space<vmem>>, %arg9: memref<32x32xf32, #tpu.memory_space<vmem>>, %arg10: memref<16x128xf32, #tpu.memory_space<vmem>>, %arg11: memref<8x1xf32, #tpu.memory_space<vmem>>) attributes {dimension_semantics = [#tpu.dimension_semantics<parallel>], iteration_bounds = array<i64: 2>, scalar_prefetch = 0 : i64, scratch_operands = 0 : i64, tpu.core_type = #tpu.core_type<tc>, window_params = [{transform_indices = @transform_0, window_bounds = array<i64: 8, 24>}, {pipeline_mode = #tpu.pipeline_mode<synchronous>, transform_indices = @transform_1, window_bounds = array<i64: 24, 48>}, {pipeline_mode = #tpu.pipeline_mode<synchronous>, transform_indices = @transform_2, window_bounds = array<i64: 48, 48>}, {pipeline_mode = #tpu.pipeline_mode<synchronous>, transform_indices = @transform_3, window_bounds = array<i64: 48, 128>}, {pipeline_mode = #tpu.pipeline_mode<synchronous>, transform_indices = @transform_4, window_bounds = array<i64: 128, 32>}, {pipeline_mode = #tpu.pipeline_mode<synchronous>, transform_indices = @transform_5, window_bounds = array<i64: 32, 1>}, {pipeline_mode = #tpu.pipeline_mode<synchronous>, transform_indices = @transform_6, window_bounds = array<i64: 48, 48>}, {pipeline_mode = #tpu.pipeline_mode<synchronous>, transform_indices = @transform_7, window_bounds = array<i64: 128, 128>}, {pipeline_mode = #tpu.pipeline_mode<synchronous>, transform_indices = @transform_8, window_bounds = array<i64: 32, 32>}, {pipeline_mode = #tpu.pipeline_mode<synchronous>, transform_indices = @transform_9, window_bounds = array<i64: 16, 128>}, {transform_indices = @transform_10, window_bounds = array<i64: 8, 1>}]} {
    %c0 = arith.constant 0 : index
    %c0_0 = arith.constant 0 : index
    %0 = vector.load %arg10[%c0, %c0_0] : memref<16x128xf32, #tpu.memory_space<vmem>>, vector<1x48xf32>
    %c1 = arith.constant 1 : index
    %c0_1 = arith.constant 0 : index
    %1 = vector.load %arg10[%c1, %c0_1] : memref<16x128xf32, #tpu.memory_space<vmem>>, vector<1x48xf32>
    %c2 = arith.constant 2 : index
    %c0_2 = arith.constant 0 : index
    %2 = vector.load %arg10[%c2, %c0_2] : memref<16x128xf32, #tpu.memory_space<vmem>>, vector<1x48xf32>
    %c3 = arith.constant 3 : index
    %c0_3 = arith.constant 0 : index
    %3 = vector.load %arg10[%c3, %c0_3] : memref<16x128xf32, #tpu.memory_space<vmem>>, vector<1x48xf32>
    %c4 = arith.constant 4 : index
    %c0_4 = arith.constant 0 : index
    %4 = vector.load %arg10[%c4, %c0_4] : memref<16x128xf32, #tpu.memory_space<vmem>>, vector<1x48xf32>
    %c5 = arith.constant 5 : index
    %c0_5 = arith.constant 0 : index
    %5 = vector.load %arg10[%c5, %c0_5] : memref<16x128xf32, #tpu.memory_space<vmem>>, vector<1x48xf32>
    %c6 = arith.constant 6 : index
    %c0_6 = arith.constant 0 : index
    %6 = vector.load %arg10[%c6, %c0_6] : memref<16x128xf32, #tpu.memory_space<vmem>>, vector<1x128xf32>
    %c7 = arith.constant 7 : index
    %c0_7 = arith.constant 0 : index
    %7 = vector.load %arg10[%c7, %c0_7] : memref<16x128xf32, #tpu.memory_space<vmem>>, vector<1x128xf32>
    %c8 = arith.constant 8 : index
    %c0_8 = arith.constant 0 : index
    %8 = vector.load %arg10[%c8, %c0_8] : memref<16x128xf32, #tpu.memory_space<vmem>>, vector<1x128xf32>
    %c9 = arith.constant 9 : index
    %c0_9 = arith.constant 0 : index
    %9 = vector.load %arg10[%c9, %c0_9] : memref<16x128xf32, #tpu.memory_space<vmem>>, vector<1x32xf32>
    %c10 = arith.constant 10 : index
    %c0_10 = arith.constant 0 : index
    %10 = vector.load %arg10[%c10, %c0_10] : memref<16x128xf32, #tpu.memory_space<vmem>>, vector<1x32xf32>
    %c11 = arith.constant 11 : index
    %c0_11 = arith.constant 0 : index
    %11 = vector.load %arg10[%c11, %c0_11] : memref<16x128xf32, #tpu.memory_space<vmem>>, vector<1x32xf32>
    %c12 = arith.constant 12 : index
    %c0_12 = arith.constant 0 : index
    %12 = vector.load %arg10[%c12, %c0_12] : memref<16x128xf32, #tpu.memory_space<vmem>>, vector<1x1xf32>
    %c0_13 = arith.constant 0 : index
    %c0_14 = arith.constant 0 : index
    %13 = vector.load %arg1[%c0_13, %c0_14] : memref<8x24xf32, #tpu.memory_space<vmem>>, vector<8x24xf32>
    %c0_15 = arith.constant 0 : index
    %c0_16 = arith.constant 0 : index
    %14 = vector.load %arg7[%c0_15, %c0_16] : memref<48x48xf32, #tpu.memory_space<vmem>>, vector<48x48xf32>
    %c0_17 = arith.constant 0 : index
    %c0_18 = arith.constant 0 : index
    %15 = vector.load %arg2[%c0_17, %c0_18] : memref<24x48xf32, #tpu.memory_space<vmem>>, vector<24x48xf32>
    %cst = arith.constant dense<0.000000e+00> : vector<8x48xf32>
    %16 = tpu.matmul %13, %15, %cst {dimension_numbers = #tpu.dot_dimension_numbers<[1], [0], [0], [1], [0, 0, 1, 1], [], []>} : vector<8x24xf32>, vector<24x48xf32>, vector<8x48xf32> -> vector<8x48xf32>
    %17 = vector.broadcast %0 : vector<1x48xf32> to vector<8x48xf32>
    %18 = arith.addf %16, %17 : vector<8x48xf32>
    %cst_19 = arith.constant dense<0.000000e+00> : vector<8x48xf32>
    %19 = tpu.matmul %18, %14, %cst_19 {dimension_numbers = #tpu.dot_dimension_numbers<[1], [0], [0], [1], [0, 0, 1, 1], [], []>} : vector<8x48xf32>, vector<48x48xf32>, vector<8x48xf32> -> vector<8x48xf32>
    %20 = arith.subf %18, %19 : vector<8x48xf32>
    %21 = arith.mulf %20, %20 : vector<8x48xf32>
    %cst_20 = arith.constant dense<0.000000e+00> : vector<8x48xf32>
    %22 = tpu.matmul %21, %14, %cst_20 {dimension_numbers = #tpu.dot_dimension_numbers<[1], [0], [0], [1], [0, 0, 1, 1], [], []>} : vector<8x48xf32>, vector<48x48xf32>, vector<8x48xf32> -> vector<8x48xf32>
    %cst_21 = arith.constant 9.99999974E-6 : f32
    %23 = vector.broadcast %cst_21 : f32 to vector<8x48xf32>
    %24 = arith.addf %22, %23 : vector<8x48xf32>
    %25 = math.rsqrt %24 : vector<8x48xf32>
    %26 = arith.mulf %20, %25 : vector<8x48xf32>
    %27 = vector.broadcast %1 : vector<1x48xf32> to vector<8x48xf32>
    %28 = arith.mulf %26, %27 : vector<8x48xf32>
    %29 = vector.broadcast %2 : vector<1x48xf32> to vector<8x48xf32>
    %30 = arith.addf %28, %29 : vector<8x48xf32>
    %cst_22 = arith.constant 5.000000e-01 : f32
    %31 = vector.broadcast %cst_22 : f32 to vector<8x48xf32>
    %32 = arith.mulf %31, %30 : vector<8x48xf32>
    %cst_23 = arith.constant 0.707106769 : f32
    %33 = vector.broadcast %cst_23 : f32 to vector<8x48xf32>
    %34 = arith.mulf %30, %33 : vector<8x48xf32>
    %35 = math.erf %34 : vector<8x48xf32>
    %cst_24 = arith.constant 1.000000e+00 : f32
    %36 = vector.broadcast %cst_24 : f32 to vector<8x48xf32>
    %37 = arith.addf %36, %35 : vector<8x48xf32>
    %38 = arith.mulf %32, %37 : vector<8x48xf32>
    %c0_25 = arith.constant 0 : index
    %c0_26 = arith.constant 0 : index
    %39 = vector.load %arg3[%c0_25, %c0_26] : memref<48x48xf32, #tpu.memory_space<vmem>>, vector<48x48xf32>
    %cst_27 = arith.constant dense<0.000000e+00> : vector<8x48xf32>
    %40 = tpu.matmul %38, %39, %cst_27 {dimension_numbers = #tpu.dot_dimension_numbers<[1], [0], [0], [1], [0, 0, 1, 1], [], []>} : vector<8x48xf32>, vector<48x48xf32>, vector<8x48xf32> -> vector<8x48xf32>
    %41 = vector.broadcast %3 : vector<1x48xf32> to vector<8x48xf32>
    %42 = arith.addf %40, %41 : vector<8x48xf32>
    %cst_28 = arith.constant dense<0.000000e+00> : vector<8x48xf32>
    %43 = tpu.matmul %42, %14, %cst_28 {dimension_numbers = #tpu.dot_dimension_numbers<[1], [0], [0], [1], [0, 0, 1, 1], [], []>} : vector<8x48xf32>, vector<48x48xf32>, vector<8x48xf32> -> vector<8x48xf32>
    %44 = arith.subf %42, %43 : vector<8x48xf32>
    %45 = arith.mulf %44, %44 : vector<8x48xf32>
    %cst_29 = arith.constant dense<0.000000e+00> : vector<8x48xf32>
    %46 = tpu.matmul %45, %14, %cst_29 {dimension_numbers = #tpu.dot_dimension_numbers<[1], [0], [0], [1], [0, 0, 1, 1], [], []>} : vector<8x48xf32>, vector<48x48xf32>, vector<8x48xf32> -> vector<8x48xf32>
    %cst_30 = arith.constant 9.99999974E-6 : f32
    %47 = vector.broadcast %cst_30 : f32 to vector<8x48xf32>
    %48 = arith.addf %46, %47 : vector<8x48xf32>
    %49 = math.rsqrt %48 : vector<8x48xf32>
    %50 = arith.mulf %44, %49 : vector<8x48xf32>
    %51 = vector.broadcast %4 : vector<1x48xf32> to vector<8x48xf32>
    %52 = arith.mulf %50, %51 : vector<8x48xf32>
    %53 = vector.broadcast %5 : vector<1x48xf32> to vector<8x48xf32>
    %54 = arith.addf %52, %53 : vector<8x48xf32>
    %cst_31 = arith.constant 5.000000e-01 : f32
    %55 = vector.broadcast %cst_31 : f32 to vector<8x48xf32>
    %56 = arith.mulf %55, %54 : vector<8x48xf32>
    %cst_32 = arith.constant 0.707106769 : f32
    %57 = vector.broadcast %cst_32 : f32 to vector<8x48xf32>
    %58 = arith.mulf %54, %57 : vector<8x48xf32>
    %59 = math.erf %58 : vector<8x48xf32>
    %cst_33 = arith.constant 1.000000e+00 : f32
    %60 = vector.broadcast %cst_33 : f32 to vector<8x48xf32>
    %61 = arith.addf %60, %59 : vector<8x48xf32>
    %62 = arith.mulf %56, %61 : vector<8x48xf32>
    %c0_34 = arith.constant 0 : index
    %c0_35 = arith.constant 0 : index
    %63 = vector.load %arg4[%c0_34, %c0_35] : memref<48x128xf32, #tpu.memory_space<vmem>>, vector<48x128xf32>
    %cst_36 = arith.constant dense<0.000000e+00> : vector<8x128xf32>
    %64 = tpu.matmul %62, %63, %cst_36 {dimension_numbers = #tpu.dot_dimension_numbers<[1], [0], [0], [1], [0, 0, 1, 1], [], []>} : vector<8x48xf32>, vector<48x128xf32>, vector<8x128xf32> -> vector<8x128xf32>
    %65 = vector.broadcast %6 : vector<1x128xf32> to vector<8x128xf32>
    %66 = arith.addf %64, %65 : vector<8x128xf32>
    %c0_37 = arith.constant 0 : index
    %c0_38 = arith.constant 0 : index
    %67 = vector.load %arg8[%c0_37, %c0_38] : memref<128x128xf32, #tpu.memory_space<vmem>>, vector<128x128xf32>
    %cst_39 = arith.constant dense<0.000000e+00> : vector<8x128xf32>
    %68 = tpu.matmul %66, %67, %cst_39 {dimension_numbers = #tpu.dot_dimension_numbers<[1], [0], [0], [1], [0, 0, 1, 1], [], []>} : vector<8x128xf32>, vector<128x128xf32>, vector<8x128xf32> -> vector<8x128xf32>
    %69 = arith.subf %66, %68 : vector<8x128xf32>
    %70 = arith.mulf %69, %69 : vector<8x128xf32>
    %cst_40 = arith.constant dense<0.000000e+00> : vector<8x128xf32>
    %71 = tpu.matmul %70, %67, %cst_40 {dimension_numbers = #tpu.dot_dimension_numbers<[1], [0], [0], [1], [0, 0, 1, 1], [], []>} : vector<8x128xf32>, vector<128x128xf32>, vector<8x128xf32> -> vector<8x128xf32>
    %cst_41 = arith.constant 9.99999974E-6 : f32
    %72 = vector.broadcast %cst_41 : f32 to vector<8x128xf32>
    %73 = arith.addf %71, %72 : vector<8x128xf32>
    %74 = math.rsqrt %73 : vector<8x128xf32>
    %75 = arith.mulf %69, %74 : vector<8x128xf32>
    %76 = vector.broadcast %7 : vector<1x128xf32> to vector<8x128xf32>
    %77 = arith.mulf %75, %76 : vector<8x128xf32>
    %78 = vector.broadcast %8 : vector<1x128xf32> to vector<8x128xf32>
    %79 = arith.addf %77, %78 : vector<8x128xf32>
    %cst_42 = arith.constant 5.000000e-01 : f32
    %80 = vector.broadcast %cst_42 : f32 to vector<8x128xf32>
    %81 = arith.mulf %80, %79 : vector<8x128xf32>
    %cst_43 = arith.constant 0.707106769 : f32
    %82 = vector.broadcast %cst_43 : f32 to vector<8x128xf32>
    %83 = arith.mulf %79, %82 : vector<8x128xf32>
    %84 = math.erf %83 : vector<8x128xf32>
    %cst_44 = arith.constant 1.000000e+00 : f32
    %85 = vector.broadcast %cst_44 : f32 to vector<8x128xf32>
    %86 = arith.addf %85, %84 : vector<8x128xf32>
    %87 = arith.mulf %81, %86 : vector<8x128xf32>
    %c0_45 = arith.constant 0 : index
    %c0_46 = arith.constant 0 : index
    %88 = vector.load %arg5[%c0_45, %c0_46] : memref<128x32xf32, #tpu.memory_space<vmem>>, vector<128x32xf32>
    %cst_47 = arith.constant dense<0.000000e+00> : vector<8x32xf32>
    %89 = tpu.matmul %87, %88, %cst_47 {dimension_numbers = #tpu.dot_dimension_numbers<[1], [0], [0], [1], [0, 0, 1, 1], [], []>} : vector<8x128xf32>, vector<128x32xf32>, vector<8x32xf32> -> vector<8x32xf32>
    %90 = vector.broadcast %9 : vector<1x32xf32> to vector<8x32xf32>
    %91 = arith.addf %89, %90 : vector<8x32xf32>
    %c0_48 = arith.constant 0 : index
    %c0_49 = arith.constant 0 : index
    %92 = vector.load %arg9[%c0_48, %c0_49] : memref<32x32xf32, #tpu.memory_space<vmem>>, vector<32x32xf32>
    %cst_50 = arith.constant dense<0.000000e+00> : vector<8x32xf32>
    %93 = tpu.matmul %91, %92, %cst_50 {dimension_numbers = #tpu.dot_dimension_numbers<[1], [0], [0], [1], [0, 0, 1, 1], [], []>} : vector<8x32xf32>, vector<32x32xf32>, vector<8x32xf32> -> vector<8x32xf32>
    %94 = arith.subf %91, %93 : vector<8x32xf32>
    %95 = arith.mulf %94, %94 : vector<8x32xf32>
    %cst_51 = arith.constant dense<0.000000e+00> : vector<8x32xf32>
    %96 = tpu.matmul %95, %92, %cst_51 {dimension_numbers = #tpu.dot_dimension_numbers<[1], [0], [0], [1], [0, 0, 1, 1], [], []>} : vector<8x32xf32>, vector<32x32xf32>, vector<8x32xf32> -> vector<8x32xf32>
    %cst_52 = arith.constant 9.99999974E-6 : f32
    %97 = vector.broadcast %cst_52 : f32 to vector<8x32xf32>
    %98 = arith.addf %96, %97 : vector<8x32xf32>
    %99 = math.rsqrt %98 : vector<8x32xf32>
    %100 = arith.mulf %94, %99 : vector<8x32xf32>
    %101 = vector.broadcast %10 : vector<1x32xf32> to vector<8x32xf32>
    %102 = arith.mulf %100, %101 : vector<8x32xf32>
    %103 = vector.broadcast %11 : vector<1x32xf32> to vector<8x32xf32>
    %104 = arith.addf %102, %103 : vector<8x32xf32>
    %cst_53 = arith.constant 5.000000e-01 : f32
    %105 = vector.broadcast %cst_53 : f32 to vector<8x32xf32>
    %106 = arith.mulf %105, %104 : vector<8x32xf32>
    %cst_54 = arith.constant 0.707106769 : f32
    %107 = vector.broadcast %cst_54 : f32 to vector<8x32xf32>
    %108 = arith.mulf %104, %107 : vector<8x32xf32>
    %109 = math.erf %108 : vector<8x32xf32>
    %cst_55 = arith.constant 1.000000e+00 : f32
    %110 = vector.broadcast %cst_55 : f32 to vector<8x32xf32>
    %111 = arith.addf %110, %109 : vector<8x32xf32>
    %112 = arith.mulf %106, %111 : vector<8x32xf32>
    %c0_56 = arith.constant 0 : index
    %c0_57 = arith.constant 0 : index
    %113 = vector.load %arg6[%c0_56, %c0_57] : memref<32x1xf32, #tpu.memory_space<vmem>>, vector<32x1xf32>
    %cst_58 = arith.constant dense<0.000000e+00> : vector<8x1xf32>
    %114 = tpu.matmul %112, %113, %cst_58 {dimension_numbers = #tpu.dot_dimension_numbers<[1], [0], [0], [1], [0, 0, 1, 1], [], []>} : vector<8x32xf32>, vector<32x1xf32>, vector<8x1xf32> -> vector<8x1xf32>
    %115 = vector.broadcast %12 : vector<1x1xf32> to vector<8x1xf32>
    %116 = arith.addf %114, %115 : vector<8x1xf32>
    %c0_59 = arith.constant 0 : index
    %c0_60 = arith.constant 0 : index
    %117 = vector.load %arg11[%c0_59, %c0_60] : memref<8x1xf32, #tpu.memory_space<vmem>>, vector<8x1xf32>
    tpu.vector_store %arg11[%c0_59, %c0_60], %116 {strides = array<i32>} : memref<8x1xf32, #tpu.memory_space<vmem>>, vector<8x1xf32>,
    return
  }
  func.func @transform_0(%arg0: i32) -> (i32, i32) {
    %c0_i32 = arith.constant 0 : i32
    %c0_i32_0 = arith.constant 0 : i32
    return %arg0, %c0_i32 : i32, i32
  }
  func.func @transform_1(%arg0: i32) -> (i32, i32) {
    %c0_i32 = arith.constant 0 : i32
    %c0_i32_0 = arith.constant 0 : i32
    %c0_i32_1 = arith.constant 0 : i32
    return %c0_i32, %c0_i32_0 : i32, i32
  }
  func.func @transform_2(%arg0: i32) -> (i32, i32) {
    %c0_i32 = arith.constant 0 : i32
    %c0_i32_0 = arith.constant 0 : i32
    %c0_i32_1 = arith.constant 0 : i32
    return %c0_i32, %c0_i32_0 : i32, i32
  }
  func.func @transform_3(%arg0: i32) -> (i32, i32) {
    %c0_i32 = arith.constant 0 : i32
    %c0_i32_0 = arith.constant 0 : i32
    %c0_i32_1 = arith.constant 0 : i32
    return %c0_i32, %c0_i32_0 : i32, i32
  }
  func.func @transform_4(%arg0: i32) -> (i32, i32) {
    %c0_i32 = arith.constant 0 : i32
    %c0_i32_0 = arith.constant 0 : i32
    %c0_i32_1 = arith.constant 0 : i32
    return %c0_i32, %c0_i32_0 : i32, i32
  }
  func.func @transform_5(%arg0: i32) -> (i32, i32) {
    %c0_i32 = arith.constant 0 : i32
    %c0_i32_0 = arith.constant 0 : i32
    %c0_i32_1 = arith.constant 0 : i32
    return %c0_i32, %c0_i32_0 : i32, i32
  }
  func.func @transform_6(%arg0: i32) -> (i32, i32) {
    %c0_i32 = arith.constant 0 : i32
    %c0_i32_0 = arith.constant 0 : i32
    %c0_i32_1 = arith.constant 0 : i32
    return %c0_i32, %c0_i32_0 : i32, i32
  }
  func.func @transform_7(%arg0: i32) -> (i32, i32) {
    %c0_i32 = arith.constant 0 : i32
    %c0_i32_0 = arith.constant 0 : i32
    %c0_i32_1 = arith.constant 0 : i32
    return %c0_i32, %c0_i32_0 : i32, i32
  }
  func.func @transform_8(%arg0: i32) -> (i32, i32) {
    %c0_i32 = arith.constant 0 : i32
    %c0_i32_0 = arith.constant 0 : i32
    %c0_i32_1 = arith.constant 0 : i32
    return %c0_i32, %c0_i32_0 : i32, i32
  }
  func.func @transform_9(%arg0: i32) -> (i32, i32) {
    %c0_i32 = arith.constant 0 : i32
    %c0_i32_0 = arith.constant 0 : i32
    %c0_i32_1 = arith.constant 0 : i32
    return %c0_i32, %c0_i32_0 : i32, i32
  }
  func.func @transform_10(%arg0: i32) -> (i32, i32) {
    %c0_i32 = arith.constant 0 : i32
    %c0_i32_0 = arith.constant 0 : i32
    return %arg0, %c0_i32 : i32, i32
  }
}

</mosaic_0001>

<bundles_post_ra>
// kernel: tpu_custom_call.1
= control target key start
LH: loop header
LB: loop body
LE: loop exit
PB: predicated region body
PF: predicated region fallthrough
CT: control target
= control target key end

     0   :  { %s1915_s0 = inlined_call_operand.hbm [shape: f32[16,24], index: 0, kind: input, shape index: {}]   ;;  %s1916_s1 = inlined_call_operand.hbm [shape: f32[24,48], index: 1, kind: input, shape index: {}]   ;;  %s1917_s2 = inlined_call_operand.hbm [shape: f32[48,48], index: 2, kind: input, shape index: {}]   ;;  %s1918_s3 = inlined_call_operand.hbm [shape: f32[48,128], index: 3, kind: input, shape index: {}]   ;;  %s1919_s4 = inlined_call_operand.vmem [shape: f32[128,32], index: 4, kind: input, shape index: {}]   ;;  %s1920_s5 = inlined_call_operand.vmem [shape: f32[32,1], index: 5, kind: input, shape index: {}]   ;;  %s1921_s6 = inlined_call_operand.hbm [shape: f32[48,48], index: 6, kind: input, shape index: {}]   ;;  %s1922_s7 = inlined_call_operand.vmem [shape: f32[128,128], index: 7, kind: input, shape index: {}]   ;;  %s1923_s8 = inlined_call_operand.vmem [shape: f32[32,32], index: 8, kind: input, shape index: {}]   ;;  %s1924_s9 = inlined_call_operand.hbm [shape: f32[16,128], index: 9, kind: input, shape index: {}]   ;;  %s1925_s10 = inlined_call_operand.vmem [shape: f32[16,1], index: 10, kind: output, shape index: {}]  }
   0x1   :  { %1926 = sst [smem:[#allocation16_spill]] %s1916_s1 }
   0x2   :  { %15 = vsyncpa [#allocation3], 0 }
   0x3   :  { %17 = vsyncpa [#allocation3 + $0x1], 0 }
   0x4   :  { %18 = vsyncpa [#allocation5], 0 }
   0x5   :  { %19 = vsyncpa [#allocation8], 0 }
   0x6   :  { %20 = vsyncpa [#allocation11], 0  ;;  %s1637_s13 = smov 0   ;;  %s1639_s14 = smov 0  }
   0x7   :  { %s1641_s15 = smov 0   ;;  %s1643_s16 = smov 0  }
   0x8 LB: > { %s1927_s1 = sld [smem:[#allocation16_spill]]  ;;  %s1661_s20 = sadd.s32 4294967295, %s1573_s16   ;;  %s1573_s16 = sphi %s1643_s16, %s1935_s16   ;;  %s1569_s15 = sphi %s1641_s15, %s1934_s15   ;;  %s1565_s14 = sphi %s1639_s14, %s1933_s14   ;;  %s1561_s13 = sphi %s1637_s13, %s1932_s13  }
   0x9   : > { %p1193_p0 = scmp.ge.s32.totalorder %s1573_s16, 1  ;;  %p47_p1 = scmp.eq.s32.totalorder %s1661_s20, 0 }
   0xa   : > { %p272_p2 = scmp.lt.s32.totalorder %s1573_s16, 3  ;;  %s1575_s22 = smov [#allocation4]  }
   0xb   : > { %s285_s23 = sshll.u32 %s1575_s22, 4  ;;  %s311_s26 = sshll.u32 %s1918_s3, 4  ;;  %s286_s23 = int_to_ptr.vmem [resolvable:$true] %s285_s23  ;;  %s312_s26 = int_to_ptr.hbm [resolvable:$true] %s311_s26 }
   0xc   : > { %p1666_p3 = pnand %p1193_p0, %p272_p2  ;;  %s297_s30 = sshll.u32 %s1917_s2, 4  ;;  %s298_s30 = int_to_ptr.hbm [resolvable:$true] %s297_s30 }
   0xd   : > { %s1576_s11 = smov [#allocation7]   ;;  %s1577_s17 = smov 128  }
   0xe   : > { %s283_s19 = sshll.u32 %s1927_s1, 4  ;;  %p1248_p4 = pneg %p1666_p3  ;;  %s284_s19 = int_to_ptr.hbm [resolvable:$true] %s283_s19 }
   0xf   : > { %s313_s12 = sshll.u32 %s1576_s11, 4  ;;  %s1578_s18 = smov 8   ;;  %s314_s12 = int_to_ptr.vmem [resolvable:$true] %s313_s12 }
  0x10   : > { %p1677_p5 = pnand %p1248_p4, %p47_p1  ;;  %s331_s25 = sshll.u32 %s1921_s6, 4  ;;  %s332_s25 = int_to_ptr.hbm [resolvable:$true] %s331_s25 }
  0x11   : > { %s1579_s1 = smov [#allocation6]   ;;  %s351_s11 = sshll.u32 %s1924_s9, 4  ;;  %s352_s11 = int_to_ptr.hbm [resolvable:$true] %s351_s11 }
  0x12   : > { %1251 = dma.hbm_to_vmem [thread:$0]  (!%p1677_p5), %s284_s19, 384, %s286_s23, [#allocation5], %s1577_s17, %s1577_s17, %s1578_s18  }
  0x13   : > { %1257 = dma.hbm_to_vmem [thread:$0]  (!%p1677_p5), %s312_s26, 768, %s314_s12, [#allocation8], %s1577_s17, %s1577_s17, %s1578_s18  }
  0x14   : > { %s299_s28 = sshll.u32 %s1579_s1, 4  ;;  %s1580_s19 = smov [#allocation9]   ;;  %s300_s28 = int_to_ptr.vmem [resolvable:$true] %s299_s28 }
  0x15   : > { %1254 = dma.hbm_to_vmem [thread:$0]  (!%p1677_p5), %s298_s30, 768, %s300_s28, [#allocation5], %s1577_s17, %s1577_s17, %s1578_s18  }
  0x16   : > { %s333_s23 = sshll.u32 %s1580_s19, 4  ;;  %s1581_s1 = smov [#allocation10]   ;;  %s334_s23 = int_to_ptr.vmem [resolvable:$true] %s333_s23 }
  0x17   : > { %1260 = dma.hbm_to_vmem [thread:$0]  (!%p1677_p5), %s332_s25, 768, %s334_s23, [#allocation8], %s1577_s17, %s1577_s17, %s1578_s18  }
  0x18   : > { %s353_s12 = sshll.u32 %s1581_s1, 4  ;;  %s1701_s30 = sadd.s32 1, %s1573_s16   ;;  %s354_s12 = int_to_ptr.vmem [resolvable:$true] %s353_s12 }
  0x19   : > { %1263 = dma.hbm_to_vmem [thread:$0]  (!%p1677_p5), %s352_s11, 256, %s354_s12, [#allocation11], %s1577_s17, %s1577_s17, %s1578_s18  }
  0x1a   : > { %s30_s22 = ssub.s32 %s1573_s16, %s1701_s30  ;;  %s33_s24 = sadd.s32 1, %s1569_s15 }
  0x1b   : > { %p31_p6 = scmp.eq.s32.totalorder %s30_s22, 0  ;;  %p40_p7 = scmp.ne.s32.totalorder %s1569_s15, %s1565_s14 }
  0x1c   : > { %p41_p8 = scmp.eq.s32.totalorder %s1573_s16, 0  ;;  %p46_p9 = scmp.ne.s32.totalorder %s1565_s14, %s1561_s13 }
  0x1d   : > { %s1712_s28 = scalar_select %p31_p6, %s1569_s15, %s33_s24  }
  0x1e   : > { %p42_p10 = por %p41_p8, %p40_p7  ;;  %p1716_p11 = por %p47_p1, %p46_p9 }
  0x1f   : > { %p1273_p12 = scmp.lt.s32.totalorder %s1573_s16, 2  ;;  %s367_s27 = sand.u32 1, %s1569_s15  }
  0x20   : > { %s1200_s17 = sshll.u32 %s367_s27, 3  ;;  %s1201_s18 = sshll.u32 %s1573_s16, 3 }
  0x21   : > { %s375_s26 = scalar_lea.hbm %s1915_s0, %s1201_s18  ;;  %s371_s29 = scalar_lea.vmem [#allocation2], %s1200_s17 }
  0x22   : > { %s379_s11 = sshll.u32 %s371_s29, 4  ;;  %s377_s1 = sshll.u32 %s375_s26, 4  ;;  %s380_s11 = int_to_ptr.vmem [resolvable:$true] %s379_s11  ;;  %s378_s1 = int_to_ptr.hbm [resolvable:$true] %s377_s1 }
  0x23   : > { %p1726_p13 = pnand %p1273_p12, %p42_p10  ;;  %s368_s12 = scalar_lea.sflag [#allocation3], %s367_s27 }
  0x24   : > { %s1497_s22 = sshra.s32 %s378_s1, 4  ;;  %s1504_s18 = scalar_lea.hbm %s1915_s0, 16  ;;  %s1498_s22 = int_to_ptr.hbm [resolvable:$true] %s1497_s22 }
  0x25   : > { %s1499_s24 = scalar_lea.hbm %s1498_s22, 8  ;;  %p1501_p2 = pneg %p1726_p13 }
  0x26   : > { %p1500_p0 = scmp.ne.s32.totalorder %s1498_s22, %s1499_s24  ;;  %p1505_p6 = scmp.lt.s32.totalorder %s1498_s22, %s1915_s0 }
  0x27   : > { %p1506_p7 = scmp.lt.s32.totalorder %s1504_s18, %s1499_s24 }
  0x28   : > { %p1502_p4 = pnand %p1501_p2, %p1500_p0 }
  0x29   : > { %p1507_p8 = por %p1506_p7, %p1505_p6 }
  0x2a   : > { %p1503_p5 = pneg %p1502_p4 }
  0x2c   : > { %p1508_p9 = pnand %p1507_p8, %p1503_p5 }
  0x2e   : > { %1511 = shalt.err (!%p1508_p9)
}
  0x2f   : > { %1267 = dma.hbm_to_vmem [thread:$0]  (!%p1726_p13), %s378_s1, 128, %s380_s11, %s368_s12  }
  0x30   : > { %388 = sbr.rel (%p1666_p3) target bundleno = 2082 (0x822), region = 60  ;;  %s390_s27 = sand.u32 (!%p1666_p3), 1, %s1565_s14  }
  0x31   : > { %s1203_s26 = sshll.u32 (!%p1666_p3), %s390_s27, 3  ;;  %s391_s29 = scalar_lea.sflag (!%p1666_p3), [#allocation3], %s390_s27 }
  0x32   : > { %s394_s16 = scalar_lea.vmem (!%p1666_p3), [#allocation2], %s1203_s26 }
  0x35   : > { %1544 = dma.done.wait (%p1716_p11), %s391_s29, 128  }
  0x36   : > { %1546 = vsyncadd (%p1716_p11), %s391_s29, 4294967168 }
  0x37   : > { %1548 = dma.done.wait (%p47_p1), [#allocation5], 1152  }
  0x38   : > { %1550 = vsyncadd (%p47_p1), [#allocation5], 4294966144 }
  0x39   : > { %1552 = dma.done.wait (%p47_p1), [#allocation8], 1536  }
  0x3a   : > { %1554 = vsyncadd (%p47_p1), [#allocation8], 4294965760 }
  0x3b   : > { %1556 = dma.done.wait (%p47_p1), [#allocation11], 256  }
  0x3c   : > { %1558 = vsyncadd (%p47_p1), [#allocation11], 4294967040  ;;  %v482_v0 = vld [vmem:[#allocation4 + $0x10] sm:$0xff]  ;;  %v481_v1 = vld [vmem:[#allocation4 + $0x8] sm:$0xff]  ;;  %vm484_vm0 = vcmask 195584   ;;  %vm508_vm1 = vcmask 392192  }
  0x3d   : > { %501 = vmatpush.msra.mxu0 %v482_v0  ;;  %v480_v2 = vld [vmem:[#allocation4] sm:$0xff]  ;;  %v478_v4 = vld [vmem:[#allocation9 + $0x20] sm:$0xff]  ;;  %v477_v6 = vld [vmem:[#allocation9 + $0x18] sm:$0xff]  ;;  %p456_p1 = scmp.lt.s32.totalorder %s1661_s20, 1 }
  0x3e   : > { %v479_v3 = vld [vmem:[#allocation9 + $0x28] sm:$0xff]  ;;  %v473_v5 = vld [vmem:[%s394_s16] sm:$0xff]  ;;  %v476_v7 = vld [vmem:[#allocation9 + $0x10] sm:$0xff] }
  0x3f   : > { %522 = vmatpush.msra.mxu1 %v479_v3  ;;  %547 = vmatpush.msra.mxu2 %v479_v3  ;;  %v475_v8 = vld [vmem:[#allocation9 + $0x8] sm:$0xff]  ;;  %v474_v9 = vld [vmem:[#allocation9] sm:$0xff]  ;;  %v1318_v10 = vld [vmem:[#allocation10] ss:$0 sm:$0xff]  ;;  %s1937_s20 = smov (!%p456_p1, %s1661_s20), 1 }
  0x40   : > { %502 = vmatpush.msra.mxu0 %v481_v1  ;;  %v621_v16 = vld [vmem:[#allocation6 + $0x28] sm:$0xff]  ;;  %v620_v17 = vld [vmem:[#allocation6 + $0x20] sm:$0xff]  ;;  %v619_v18 = vld [vmem:[#allocation6 + $0x18] sm:$0xff]  ;;  %s1209_s21 = sshll.u32 %s1937_s20, 3 }
  0x41   : > { %523 = vmatpush.msra.mxu1 %v478_v4  ;;  %548 = vmatpush.msra.mxu2 %v478_v4  ;;  %v618_v19 = vld [vmem:[#allocation6 + $0x10] sm:$0xff]  ;;  %v617_v20 = vld [vmem:[#allocation6 + $0x8] sm:$0xff]  ;;  %v616_v21 = vld [vmem:[#allocation6] sm:$0xff]  ;;  %s459_s1 = scalar_lea.vmem %s1925_s10, %s1209_s21 }
  0x42   : > { %503 = vmatpush.msra.mxu0 %v480_v2  ;;  %636 = vmatpush.msra.mxu3 %v621_v16  ;;  %v1319_v30 = vld [vmem:[#allocation10 + $0x1] ss:$0 sm:$0xff]  ;;  %v1320_v33 = vld [vmem:[#allocation10 + $0x2] ss:$0 sm:$0xff] }
  0x43   : > { %1210 = vmatmul.msk.f32.vlgmr.msra.gmra.mxu0 %vm484_vm0, %v473_v5  ;;  %524 = vmatpush.msra.mxu1 %v477_v6 }
  0x44   : > { %549 = vmatpush.msra.mxu2 %v477_v6  ;;  %659 = vmatpush.msrb.mxu0 %v479_v3 }
  0x45   : > { %525 = vmatpush.msra.mxu1 %v476_v7  ;;  %637 = vmatpush.msra.mxu3 %v620_v17  ;;  %v758_v17 = vld [vmem:[#allocation7 + $0x28] sm:$0xff] }
  0x46   : > { %550 = vmatpush.msra.mxu2 %v476_v7  ;;  %660 = vmatpush.msrb.mxu0 %v478_v4 }
  0x47   : > { %526 = vmatpush.msra.mxu1 %v475_v8  ;;  %638 = vmatpush.msra.mxu3 %v619_v18  ;;  %v757_v18 = vld [vmem:[#allocation7 + $0x20] sm:$0xff] }
  0x48   : > { %661 = vmatpush.msrb.mxu0 %v477_v6  ;;  %551 = vmatpush.msra.mxu2 %v475_v8 }
  0x49   : > { %527 = vmatpush.msra.mxu1 %v474_v9  ;;  %639 = vmatpush.msra.mxu3 %v618_v19  ;;  %v756_v19 = vld [vmem:[#allocation7 + $0x18] sm:$0xff] }
  0x4a   : > { %662 = vmatpush.msrb.mxu0 %v476_v7  ;;  %552 = vmatpush.msra.mxu2 %v474_v9 }
  0x4b   : > { %684 = vmatpush.msrb.mxu1 %v479_v3  ;;  %640 = vmatpush.msra.mxu3 %v617_v20  ;;  %v755_v20 = vld [vmem:[#allocation7 + $0x10] sm:$0xff] }
  0x4c   : > { %663 = vmatpush.msrb.mxu0 %v475_v8  ;;  %773 = vmatpush.msrb.mxu2 %v758_v17 }
  0x4d   : > { %685 = vmatpush.msrb.mxu1 %v478_v4  ;;  %641 = vmatpush.msra.mxu3 %v616_v21  ;;  %v754_v21 = vld [vmem:[#allocation7 + $0x8] sm:$0xff] }
  0x4e   : > { %664 = vmatpush.msrb.mxu0 %v474_v9  ;;  %774 = vmatpush.msrb.mxu2 %v757_v18  ;;  %v786_v18 = vld [vmem:[%s1922_s7 + $0x18] sm:$0xff] }
  0x4f   : > { %686 = vmatpush.msrb.mxu1 %v477_v6 }
  0x50   : > { %775 = vmatpush.msrb.mxu2 %v756_v19 }
  0x51   : > { %687 = vmatpush.msrb.mxu1 %v476_v7 }
  0x52   : > { %776 = vmatpush.msrb.mxu2 %v755_v20 }
  0x53   : > { %688 = vmatpush.msrb.mxu1 %v475_v8 }
  0x54   : > { %777 = vmatpush.msrb.mxu2 %v754_v21  ;;  %v785_v21 = vld [vmem:[%s1922_s7 + $0x10] sm:$0xff] }
  0x55   : > { %689 = vmatpush.msrb.mxu1 %v474_v9 }
  0xc0   : > { %v505_v11 = vpop.f32.mrf.mxu0 }
  0xc1   : > { %v506_v12 = vadd.f32 %v1318_v10, %v505_v11  ;;  %v1321_v11 = vld [vmem:[#allocation10 + $0x3] ss:$0 sm:$0xff] }
  0xc3   : > { %1211 = vmatmul.msk.f32.vlgmr.msra.gmra.mxu1 %vm508_vm1, %v506_v12 }
 0x140   : > { %v529_v13 = vpop.f32.mrf.mxu1 }
 0x141   : > { %v532_v14 = vsub.f32 %v506_v12, %v529_v13 }
 0x143   : > { %v533_v15 = vmul.f32 %v532_v14, %v532_v14 }
 0x145   : > { %1212 = vmatmul.msk.f32.vlgmr.msra.gmra.mxu2 %vm508_vm1, %v533_v15 }
 0x1c8   : > { %v554_v22 = vpop.f32.mrf.mxu2 }
 0x1c9   : > { %v555_v23 = vadd.f32 1e-05, %v554_v22  ;;  %v753_v22 = vld [vmem:[#allocation7] sm:$0xff] }
 0x1ca   : > { %778 = vmatpush.msrb.mxu2 %v753_v22 }
 0x1cb   : > { %1331 = vrsqrt.f32 %v555_v23  ;;  %vm563_vm3 = vweird.f32 %v555_v23 }
 0x1d1   : > { %v1332_v24 = vpop.eup %1331 }
 0x1d2   : > { %v558_v25 = vmul.f32 %v1332_v24, %v555_v23  ;;  %vm564_vm2 = vweird.f32 %v1332_v24 }
 0x1d3   : > { %vm565_vm4 = vmor %vm563_vm3, %vm564_vm2 }
 0x1d4   : > { %v559_v26 = vmul.f32 %v1332_v24, %v558_v25 }
 0x1d6   : > { %v560_v27 = vmul.f32 0.5, %v559_v26 }
 0x1d8   : > { %v561_v28 = vsub.f32 1.5, %v560_v27 }
 0x1da   : > { %v562_v29 = vmul.f32 %v1332_v24, %v561_v28 }
 0x1dc   : > { %v566_v31 = vsel %vm565_vm4, %v1332_v24, %v562_v29 }
 0x1dd   : > { %v567_v32 = vmul.f32 %v566_v31, %v532_v14  ;;  %v1322_v31 = vld [vmem:[#allocation10 + $0x4] ss:$0 sm:$0xff] }
 0x1df   : > { %v569_v34 = vmul.f32 %v1319_v30, %v567_v32 }
 0x1e1   : > { %v571_v35 = vadd.f32 %v1320_v33, %v569_v34  ;;  %v1323_v34 = vld [vmem:[#allocation10 + $0x5] ss:$0 sm:$0xff] }
 0x1e3   : > { %v573_v36 = vmul.f32 0.70710677, %v571_v35  ;;  %v572_v8 = vmul.f32 0.5, %v571_v35 }
 0x1e5   : > { %v574_v37 = vmul.f32 %v573_v36, %v573_v36 }
 0x1e7   : > { %v575_v38 = vmin.f32 %v574_v37, 16.0 }
 0x1e9   : > { %v576_v39 = vmul.f32 2.1237322e-06, %v575_v38  ;;  %v587_v40 = vmul.f32 3.8918573e-05, %v575_v38 }
 0x1eb   : > { %v577_v41 = vadd.f32 0.00028619796, %v576_v39  ;;  %v588_v42 = vadd.f32 0.001143296, %v587_v40 }
 0x1ed   : > { %v578_v43 = vmul.f32 %v577_v41, %v575_v38  ;;  %v589_v44 = vmul.f32 %v588_v42, %v575_v38 }
 0x1ef   : > { %v590_v45 = vadd.f32 0.014752088, %v589_v44  ;;  %v579_v46 = vadd.f32 0.0036580483, %v578_v43 }
 0x1f1   : > { %v591_v47 = vmul.f32 %v590_v45, %v575_v38  ;;  %v580_v49 = vmul.f32 %v579_v46, %v575_v38 }
 0x1f3   : > { %v592_v48 = vadd.f32 0.112945676, %v591_v47  ;;  %v581_v52 = vadd.f32 0.05243302, %v580_v49 }
 0x1f5   : > { %v593_v50 = vmul.f32 %v592_v48, %v575_v38  ;;  %v582_v55 = vmul.f32 %v581_v52, %v575_v38  ;;  %v798_v52 = vld [vmem:[%s1922_s7 + $0x78] sm:$0xff] }
 0x1f6   : > { %799 = vmatpush.msrb.mxu3 %v798_v52  ;;  %821 = vmatpush.msra.mxu0 %v798_v52 }
 0x1f7   : > { %v594_v51 = vadd.f32 0.4994258, %v593_v50  ;;  %v583_v56 = vadd.f32 0.18741608, %v582_v55 }
 0x1f9   : > { %v595_v53 = vmul.f32 %v594_v51, %v575_v38  ;;  %v584_v58 = vmul.f32 %v583_v56, %v575_v38  ;;  %v796_v56 = vld [vmem:[%s1922_s7 + $0x68] sm:$0xff] }
 0x1fb   : > { %v596_v54 = vadd.f32 1.0, %v595_v53  ;;  %v585_v62 = vadd.f32 1.1283791, %v584_v58  ;;  %v797_v53 = vld [vmem:[%s1922_s7 + $0x70] sm:$0xff]  ;;  %v795_v58 = vld [vmem:[%s1922_s7 + $0x60] sm:$0xff] }
 0x1fc   : > { %800 = vmatpush.msrb.mxu3 %v797_v53  ;;  %822 = vmatpush.msra.mxu0 %v797_v53  ;;  %v902_v53 = vld [vmem:[%s1919_s4 + $0x10] sm:$0xff] }
 0x1fd   : > { %1333 = vrcp.f32 %v596_v54  ;;  %v608_v61 = vand.u32 2147483648, %v596_v54  ;;  %v606_v0 = vand.u32 2147483647, %v596_v54  ;;  %vm602_vm6 = vweird.f32 %v596_v54 }
 0x1fe   : > { %v586_v3 = vmul.f32 %v585_v62, %v573_v36  ;;  %801 = vmatpush.msrb.mxu3 %v796_v56  ;;  %823 = vmatpush.msra.mxu0 %v796_v56  ;;  %v793_v62 = vld [vmem:[%s1922_s7 + $0x50] sm:$0xff] }
 0x1ff   : > { %v609_v2 = vor.u32 1.1754944e-38, %v608_v61  ;;  %vm607_vm8 = vcmp.eq.f32.partialorder %v606_v0, 8.507059e+37  ;;  %v794_v61 = vld [vmem:[%s1922_s7 + $0x58] sm:$0xff]  ;;  %v792_v0 = vld [vmem:[%s1922_s7 + $0x48] sm:$0xff] }
 0x200   : > { %802 = vmatpush.msrb.mxu3 %v795_v58  ;;  %824 = vmatpush.msra.mxu0 %v795_v58  ;;  %v900_v58 = vld [vmem:[%s1919_s4] sm:$0xff] }
 0x202   : > { %803 = vmatpush.msrb.mxu3 %v794_v61  ;;  %825 = vmatpush.msra.mxu0 %v794_v61  ;;  %v1326_v61 = vld [vmem:[#allocation10 + $0x8] ss:$0 sm:$0xff] }
 0x203   : > { %v1334_v57 = vpop.eup %1333 }
 0x204   : > { %v598_v59 = vmul.f32 %v1334_v57, %v596_v54  ;;  %vm603_vm5 = vweird.f32 %v1334_v57  ;;  %804 = vmatpush.msrb.mxu3 %v793_v62  ;;  %826 = vmatpush.msra.mxu0 %v793_v62 }
 0x205   : > { %vm604_vm7 = vmor %vm602_vm6, %vm603_vm5 }
 0x206   : > { %v599_v60 = vsub.f32 1.0, %v598_v59  ;;  %805 = vmatpush.msrb.mxu3 %v792_v0  ;;  %827 = vmatpush.msra.mxu0 %v792_v0 }
 0x208   : > { %v600_v63 = vmul.f32 %v1334_v57, %v599_v60 }
 0x20a   : > { %v601_v1 = vadd.f32 %v1334_v57, %v600_v63 }
 0x20c   : > { %v605_v4 = vsel %vm604_vm7, %v1334_v57, %v601_v1  ;;  %v791_v1 = vld [vmem:[%s1922_s7 + $0x40] sm:$0xff]  ;;  %vm941_vm7 = vcmask 261120  }
 0x20d   : > { %v610_v5 = vsel %vm607_vm8, %v609_v2, %v605_v4  ;;  %806 = vmatpush.msrb.mxu3 %v791_v1  ;;  %828 = vmatpush.msra.mxu0 %v791_v1 }
 0x20e   : > { %v611_v6 = vmul.f32 %v610_v5, %v586_v3  ;;  %v790_v5 = vld [vmem:[%s1922_s7 + $0x38] sm:$0xff] }
 0x20f   : > { %807 = vmatpush.msrb.mxu3 %v790_v5  ;;  %829 = vmatpush.msra.mxu0 %v790_v5 }
 0x210   : > { %v1213_v7 = vclamps-f32 %v611_v6, 1.0 }
 0x212   : > { %v614_v9 = vadd.f32 1.0, %v1213_v7  ;;  %v789_v7 = vld [vmem:[%s1922_s7 + $0x30] sm:$0xff] }
 0x213   : > { %808 = vmatpush.msrb.mxu3 %v789_v7  ;;  %830 = vmatpush.msra.mxu0 %v789_v7 }
 0x214   : > { %v615_v10 = vmul.f32 %v614_v9, %v572_v8 }
 0x216   : > { %1214 = vmatmul.msk.f32.vlgmr.msra.gmra.mxu3 %vm508_vm1, %v615_v10 }
 0x299   : > { %v643_v12 = vpop.f32.mrf.mxu3 }
 0x29a   : > { %v644_v13 = vadd.f32 %v1321_v11, %v643_v12  ;;  %v788_v12 = vld [vmem:[%s1922_s7 + $0x28] sm:$0xff] }
 0x29b   : > { %809 = vmatpush.msrb.mxu3 %v788_v12  ;;  %831 = vmatpush.msra.mxu0 %v788_v12 }
 0x29c   : > { %1215 = vmatmul.msk.f32.vlgmr.msrb.gmra.mxu0 %vm508_vm1, %v644_v13 }
 0x319   : > { %v666_v14 = vpop.f32.mrf.mxu0 }
 0x31a   : > { %v669_v15 = vsub.f32 %v644_v13, %v666_v14  ;;  %v787_v14 = vld [vmem:[%s1922_s7 + $0x20] sm:$0xff] }
 0x31b   : > { %810 = vmatpush.msrb.mxu3 %v787_v14  ;;  %832 = vmatpush.msra.mxu0 %v787_v14 }
 0x31c   : > { %v670_v16 = vmul.f32 %v669_v15, %v669_v15 }
 0x31d   : > { %811 = vmatpush.msrb.mxu3 %v786_v18  ;;  %833 = vmatpush.msra.mxu0 %v786_v18 }
 0x31e   : > { %1216 = vmatmul.msk.f32.vlgmr.msrb.gmra.mxu1 %vm508_vm1, %v670_v16 }
 0x31f   : > { %812 = vmatpush.msrb.mxu3 %v785_v21  ;;  %834 = vmatpush.msra.mxu0 %v785_v21 }
 0x39b   : > { %v691_v23 = vpop.f32.mrf.mxu1 }
 0x39c   : > { %v692_v24 = vadd.f32 1e-05, %v691_v23 }
 0x39e   : > { %1335 = vrsqrt.f32 %v692_v24  ;;  %vm700_vm10 = vweird.f32 %v692_v24 }
 0x3a4   : > { %v1336_v25 = vpop.eup %1335 }
 0x3a5   : > { %v695_v26 = vmul.f32 %v1336_v25, %v692_v24  ;;  %vm701_vm9 = vweird.f32 %v1336_v25 }
 0x3a6   : > { %vm702_vm11 = vmor %vm700_vm10, %vm701_vm9 }
 0x3a7   : > { %v696_v27 = vmul.f32 %v1336_v25, %v695_v26  ;;  %v784_v26 = vld [vmem:[%s1922_s7 + $0x8] sm:$0xff] }
 0x3a8   : > { %813 = vmatpush.msrb.mxu3 %v784_v26  ;;  %835 = vmatpush.msra.mxu0 %v784_v26 }
 0x3a9   : > { %v697_v28 = vmul.f32 0.5, %v696_v27  ;;  %v783_v27 = vld [vmem:[%s1922_s7] sm:$0xff] }
 0x3aa   : > { %814 = vmatpush.msrb.mxu3 %v783_v27  ;;  %836 = vmatpush.msra.mxu0 %v783_v27 }
 0x3ab   : > { %v698_v29 = vsub.f32 1.5, %v697_v28  ;;  %v1324_v28 = vld [vmem:[#allocation10 + $0x6] ss:$0 sm:$0xff] }
 0x3ad   : > { %v699_v30 = vmul.f32 %v1336_v25, %v698_v29 }
 0x3af   : > { %v703_v32 = vsel %vm702_vm11, %v1336_v25, %v699_v30 }
 0x3b0   : > { %v704_v33 = vmul.f32 %v703_v32, %v669_v15 }
 0x3b2   : > { %v706_v35 = vmul.f32 %v1322_v31, %v704_v33 }
 0x3b4   : > { %v1764_v36 = vadd.f32 %v1323_v34, %v706_v35  ;;  %v915_v34 = vld [vmem:[%s1919_s4 + $0x78] sm:$0xff]  ;;  %v914_v35 = vld [vmem:[%s1919_s4 + $0x70] sm:$0xff] }
 0x3b5   : > { %917 = vmatpush.msra.mxu1 %v915_v34 }
 0x3b6   : > { %v1767_v37 = vmul.f32 0.70710677, %v1764_v36  ;;  %v709_v23 = vmul.f32 0.5, %v1764_v36  ;;  %v913_v36 = vld [vmem:[%s1919_s4 + $0x68] sm:$0xff] }
 0x3b7   : > { %918 = vmatpush.msra.mxu1 %v914_v35 }
 0x3b8   : > { %v711_v38 = vmul.f32 %v1767_v37, %v1767_v37 }
 0x3b9   : > { %919 = vmatpush.msra.mxu1 %v913_v36 }
 0x3ba   : > { %v712_v39 = vmin.f32 %v711_v38, 16.0  ;;  %v911_v38 = vld [vmem:[%s1919_s4 + $0x58] sm:$0xff] }
 0x3bc   : > { %v713_v40 = vmul.f32 2.1237322e-06, %v712_v39  ;;  %v724_v41 = vmul.f32 3.8918573e-05, %v712_v39 }
 0x3be   : > { %v714_v42 = vadd.f32 0.00028619796, %v713_v40  ;;  %v725_v43 = vadd.f32 0.001143296, %v724_v41 }
 0x3c0   : > { %v715_v44 = vmul.f32 %v714_v42, %v712_v39  ;;  %v726_v45 = vmul.f32 %v725_v43, %v712_v39  ;;  %v909_v42 = vld [vmem:[%s1919_s4 + $0x48] sm:$0xff]  ;;  %v908_v43 = vld [vmem:[%s1919_s4 + $0x40] sm:$0xff] }
 0x3c2   : > { %v727_v46 = vadd.f32 0.014752088, %v726_v45  ;;  %v716_v47 = vadd.f32 0.0036580483, %v715_v44  ;;  %v907_v44 = vld [vmem:[%s1919_s4 + $0x38] sm:$0xff]  ;;  %v906_v45 = vld [vmem:[%s1919_s4 + $0x30] sm:$0xff] }
 0x3c4   : > { %v728_v48 = vmul.f32 %v727_v46, %v712_v39  ;;  %v717_v50 = vmul.f32 %v716_v47, %v712_v39  ;;  %v905_v47 = vld [vmem:[%s1919_s4 + $0x28] sm:$0xff] }
 0x3c6   : > { %v729_v49 = vadd.f32 0.112945676, %v728_v48  ;;  %v718_v55 = vadd.f32 0.05243302, %v717_v50 }
 0x3c8   : > { %v730_v51 = vmul.f32 %v729_v49, %v712_v39  ;;  %v719_v60 = vmul.f32 %v718_v55, %v712_v39  ;;  %v904_v49 = vld [vmem:[%s1919_s4 + $0x20] sm:$0xff]  ;;  %v901_v55 = vld [vmem:[%s1919_s4 + $0x8] sm:$0xff] }
 0x3ca   : > { %v731_v54 = vadd.f32 0.4994258, %v730_v51  ;;  %v720_v63 = vadd.f32 0.18741608, %v719_v60  ;;  %v903_v51 = vld [vmem:[%s1919_s4 + $0x18] sm:$0xff] }
 0x3cc   : > { %v732_v57 = vmul.f32 %v731_v54, %v712_v39  ;;  %v721_v3 = vmul.f32 %v720_v63, %v712_v39  ;;  %v910_v39 = vld [vmem:[%s1919_s4 + $0x50] sm:$0xff] }
 0x3ce   : > { %v733_v59 = vadd.f32 1.0, %v732_v57  ;;  %v722_v9 = vadd.f32 1.1283791, %v721_v3  ;;  %v1325_v57 = vld [vmem:[#allocation10 + $0x7] ss:$0 sm:$0xff] }
 0x3d0   : > { %1337 = vrcp.f32 %v733_v59  ;;  %v745_v8 = vand.u32 2147483648, %v733_v59  ;;  %v743_v11 = vand.u32 2147483647, %v733_v59  ;;  %vm739_vm13 = vweird.f32 %v733_v59 }
 0x3d1   : > { %v723_v16 = vmul.f32 %v722_v9, %v1767_v37  ;;  %v912_v37 = vld [vmem:[%s1919_s4 + $0x60] sm:$0xff] }
 0x3d2   : > { %v746_v15 = vor.u32 1.1754944e-38, %v745_v8  ;;  %vm744_vm15 = vcmp.eq.f32.partialorder %v743_v11, 8.507059e+37  ;;  %920 = vmatpush.msra.mxu1 %v912_v37 }
 0x3d4   : > { %921 = vmatpush.msra.mxu1 %v911_v38 }
 0x3d6   : > { %v1338_v2 = vpop.eup %1337  ;;  %922 = vmatpush.msra.mxu1 %v910_v39 }
 0x3d7   : > { %v735_v4 = vmul.f32 %v1338_v2, %v733_v59  ;;  %vm740_vm12 = vweird.f32 %v1338_v2 }
 0x3d8   : > { %vm741_vm14 = vmor %vm739_vm13, %vm740_vm12  ;;  %923 = vmatpush.msra.mxu1 %v909_v42  ;;  %v937_v42 = vld [vmem:[%s1923_s8] sm:$0xff] }
 0x3d9   : > { %v736_v6 = vsub.f32 1.0, %v735_v4 }
 0x3da   : > { %924 = vmatpush.msra.mxu1 %v908_v43  ;;  %v1327_v43 = vld [vmem:[#allocation10 + $0x9] ss:$0 sm:$0xff] }
 0x3db   : > { %v737_v10 = vmul.f32 %v1338_v2, %v736_v6 }
 0x3dc   : > { %925 = vmatpush.msra.mxu1 %v907_v44 }
 0x3dd   : > { %v738_v13 = vadd.f32 %v1338_v2, %v737_v10 }
 0x3de   : > { %926 = vmatpush.msra.mxu1 %v906_v45 }
 0x3df   : > { %v742_v17 = vsel %vm741_vm14, %v1338_v2, %v738_v13 }
 0x3e0   : > { %v747_v19 = vsel %vm744_vm15, %v746_v15, %v742_v17  ;;  %927 = vmatpush.msra.mxu1 %v905_v47  ;;  %v940_v15 = vld [vmem:[%s1923_s8 + $0x18] sm:$0xff]  ;;  %vm1077_vm15 = vcmask 7168  }
 0x3e1   : > { %v748_v20 = vmul.f32 %v747_v19, %v723_v16  ;;  %v939_v16 = vld [vmem:[%s1923_s8 + $0x10] sm:$0xff]  ;;  %957 = vmatpush.msra.mxu2 %v940_v15  ;;  %v938_v19 = vld [vmem:[%s1923_s8 + $0x8] sm:$0xff] }
 0x3e2   : > { %928 = vmatpush.msra.mxu1 %v904_v49  ;;  %v1052_v49 = vld [vmem:[%s1920_s5 + $0x18] sm:$0xff] }
 0x3e3   : > { %v1217_v22 = vclamps-f32 %v748_v20, 1.0  ;;  %958 = vmatpush.msra.mxu2 %v939_v16 }
 0x3e4   : > { %929 = vmatpush.msra.mxu1 %v903_v51 }
 0x3e5   : > { %v751_v24 = vadd.f32 1.0, %v1217_v22  ;;  %959 = vmatpush.msra.mxu2 %v938_v19 }
 0x3e6   : > { %930 = vmatpush.msra.mxu1 %v902_v53  ;;  %v1050_v53 = vld [vmem:[%s1920_s5 + $0x8] sm:$0xff] }
 0x3e7   : > { %v752_v25 = vmul.f32 %v751_v24, %v709_v23  ;;  %960 = vmatpush.msra.mxu2 %v937_v42 }
 0x3e8   : > { %931 = vmatpush.msra.mxu1 %v901_v55 }
 0x3e9   : > { %1218 = vmatmul.msk.f32.vlgmr.msrb.gmra.mxu2 %vm508_vm1, %v752_v25 }
 0x3ea   : > { %932 = vmatpush.msra.mxu1 %v900_v58  ;;  %982 = vmatpush.msrb.mxu2 %v940_v15 }
 0x3ec   : > { %983 = vmatpush.msrb.mxu2 %v939_v16 }
 0x3ee   : > { %984 = vmatpush.msrb.mxu2 %v938_v19 }
 0x3f0   : > { %985 = vmatpush.msrb.mxu2 %v937_v42  ;;  %v1330_v42 = vld [vmem:[#allocation10 + $0xc] ss:$0 sm:$0xff] }
 0x46c   : > { %v780_v29 = vpop.f32.mrf.mxu2 }
 0x46d   : > { %v781_v30 = vadd.f32 %v1324_v28, %v780_v29 }
 0x46f   : > { %815 = vmatmul.f32.vlgmr.msrb.gmra.mxu3 %v781_v30 }
 0x4f2   : > { %v816_v31 = vpop.f32.mrf.mxu3 }
 0x4f3   : > { %v819_v32 = vsub.f32 %v781_v30, %v816_v31 }
 0x4f5   : > { %v820_v33 = vmul.f32 %v819_v32, %v819_v32 }
 0x4f7   : > { %837 = vmatmul.f32.vlgmr.msra.gmra.mxu0 %v820_v33 }
 0x574   : > { %v838_v40 = vpop.f32.mrf.mxu0 }
 0x575   : > { %v839_v41 = vadd.f32 1e-05, %v838_v40 }
 0x577   : > { %1339 = vrsqrt.f32 %v839_v41  ;;  %vm847_vm1 = vweird.f32 %v839_v41 }
 0x57d   : > { %v1340_v46 = vpop.eup %1339 }
 0x57e   : > { %v842_v48 = vmul.f32 %v1340_v46, %v839_v41  ;;  %vm848_vm0 = vweird.f32 %v1340_v46 }
 0x57f   : > { %vm849_vm2 = vmor %vm847_vm1, %vm848_vm0 }
 0x580   : > { %v843_v50 = vmul.f32 %v1340_v46, %v842_v48 }
 0x582   : > { %v844_v52 = vmul.f32 0.5, %v843_v50  ;;  %v1051_v50 = vld [vmem:[%s1920_s5 + $0x10] sm:$0xff] }
 0x584   : > { %v845_v54 = vsub.f32 1.5, %v844_v52 }
 0x586   : > { %v846_v56 = vmul.f32 %v1340_v46, %v845_v54  ;;  %v1049_v54 = vld [vmem:[%s1920_s5] sm:$0xff] }
 0x588   : > { %v850_v59 = vsel %vm849_vm2, %v1340_v46, %v846_v56 }
 0x589   : > { %v851_v60 = vmul.f32 %v850_v59, %v819_v32 }
 0x58b   : > { %v853_v62 = vmul.f32 %v1325_v57, %v851_v60 }
 0x58d   : > { %v855_v63 = vadd.f32 %v1326_v61, %v853_v62  ;;  %v1328_v61 = vld [vmem:[#allocation10 + $0xa] ss:$0 sm:$0xff] }
 0x58f   : > { %v857_v0 = vmul.f32 0.70710677, %v855_v63  ;;  %v856_v39 = vmul.f32 0.5, %v855_v63 }
 0x591   : > { %v858_v1 = vmul.f32 %v857_v0, %v857_v0 }
 0x593   : > { %v859_v2 = vmin.f32 %v858_v1, 16.0 }
 0x595   : > { %v860_v3 = vmul.f32 2.1237322e-06, %v859_v2  ;;  %v871_v4 = vmul.f32 3.8918573e-05, %v859_v2 }
 0x597   : > { %v861_v5 = vadd.f32 0.00028619796, %v860_v3  ;;  %v872_v6 = vadd.f32 0.001143296, %v871_v4 }
 0x599   : > { %v862_v7 = vmul.f32 %v861_v5, %v859_v2  ;;  %v873_v8 = vmul.f32 %v872_v6, %v859_v2 }
 0x59b   : > { %v874_v9 = vadd.f32 0.014752088, %v873_v8  ;;  %v863_v10 = vadd.f32 0.0036580483, %v862_v7 }
 0x59d   : > { %v875_v11 = vmul.f32 %v874_v9, %v859_v2  ;;  %v864_v13 = vmul.f32 %v863_v10, %v859_v2 }
 0x59f   : > { %v876_v12 = vadd.f32 0.112945676, %v875_v11  ;;  %v865_v18 = vadd.f32 0.05243302, %v864_v13 }
 0x5a1   : > { %v877_v14 = vmul.f32 %v876_v12, %v859_v2  ;;  %v866_v22 = vmul.f32 %v865_v18, %v859_v2 }
 0x5a3   : > { %v878_v17 = vadd.f32 0.4994258, %v877_v14  ;;  %v867_v23 = vadd.f32 0.18741608, %v866_v22 }
 0x5a5   : > { %v879_v20 = vmul.f32 %v878_v17, %v859_v2  ;;  %v868_v25 = vmul.f32 %v867_v23, %v859_v2 }
 0x5a7   : > { %v880_v21 = vadd.f32 1.0, %v879_v20  ;;  %v869_v29 = vadd.f32 1.1283791, %v868_v25 }
 0x5a9   : > { %1341 = vrcp.f32 %v880_v21  ;;  %v892_v28 = vand.u32 2147483648, %v880_v21  ;;  %v890_v31 = vand.u32 2147483647, %v880_v21  ;;  %vm886_vm4 = vweird.f32 %v880_v21 }
 0x5aa   : > { %v870_v34 = vmul.f32 %v869_v29, %v857_v0  ;;  %v1329_v0 = vld [vmem:[#allocation10 + $0xb] ss:$0 sm:$0xff] }
 0x5ab   : > { %v893_v33 = vor.u32 1.1754944e-38, %v892_v28  ;;  %vm891_vm6 = vcmp.eq.f32.partialorder %v890_v31, 8.507059e+37 }
 0x5af   : > { %v1342_v24 = vpop.eup %1341 }
 0x5b0   : > { %v882_v26 = vmul.f32 %v1342_v24, %v880_v21  ;;  %vm887_vm3 = vweird.f32 %v1342_v24 }
 0x5b1   : > { %vm888_vm5 = vmor %vm886_vm4, %vm887_vm3 }
 0x5b2   : > { %v883_v27 = vsub.f32 1.0, %v882_v26 }
 0x5b4   : > { %v884_v30 = vmul.f32 %v1342_v24, %v883_v27 }
 0x5b6   : > { %v885_v32 = vadd.f32 %v1342_v24, %v884_v30 }
 0x5b8   : > { %v889_v35 = vsel %vm888_vm5, %v1342_v24, %v885_v32 }
 0x5b9   : > { %v894_v36 = vsel %vm891_vm6, %v893_v33, %v889_v35 }
 0x5ba   : > { %v895_v37 = vmul.f32 %v894_v36, %v870_v34 }
 0x5bc   : > { %v1219_v38 = vclamps-f32 %v895_v37, 1.0 }
 0x5be   : > { %v898_v40 = vadd.f32 1.0, %v1219_v38 }
 0x5c0   : > { %v899_v41 = vmul.f32 %v898_v40, %v856_v39 }
 0x5c2   : > { %933 = vmatmul.f32.vlgmr.msra.gmra.mxu1 %v899_v41 }
 0x63f   : > { %v934_v44 = vpop.f32.mrf.mxu1 }
 0x640   : > { %v935_v45 = vadd.f32 %v1327_v43, %v934_v44 }
 0x642   : > { %1220 = vmatmul.msk.f32.vlgmr.msra.gmra.mxu2 %vm941_vm7, %v935_v45 }
 0x643   : > { %1069 = vmatpush.msra.mxu2 %v1052_v49 }
 0x645   : > { %1070 = vmatpush.msra.mxu2 %v1051_v50 }
 0x647   : > { %1071 = vmatpush.msra.mxu2 %v1050_v53 }
 0x649   : > { %1072 = vmatpush.msra.mxu2 %v1049_v54 }
 0x6c5   : > { %v962_v46 = vpop.f32.mrf.mxu2 }
 0x6c6   : > { %v965_v47 = vsub.f32 %v935_v45, %v962_v46 }
 0x6c8   : > { %v966_v48 = vmul.f32 %v965_v47, %v965_v47 }
 0x6ca   : > { %1221 = vmatmul.msk.f32.vlgmr.msrb.gmra.mxu2 %vm941_vm7, %v966_v48 }
 0x74d   : > { %v987_v51 = vpop.f32.mrf.mxu2 }
 0x74e   : > { %v988_v52 = vadd.f32 1e-05, %v987_v51 }
 0x750   : > { %1343 = vrsqrt.f32 %v988_v52  ;;  %vm996_vm9 = vweird.f32 %v988_v52 }
 0x756   : > { %v1344_v55 = vpop.eup %1343 }
 0x757   : > { %v991_v56 = vmul.f32 %v1344_v55, %v988_v52  ;;  %vm997_vm8 = vweird.f32 %v1344_v55 }
 0x758   : > { %vm998_vm10 = vmor %vm996_vm9, %vm997_vm8 }
 0x759   : > { %v992_v57 = vmul.f32 %v1344_v55, %v991_v56 }
 0x75b   : > { %v993_v58 = vmul.f32 0.5, %v992_v57 }
 0x75d   : > { %v994_v59 = vsub.f32 1.5, %v993_v58 }
 0x75f   : > { %v995_v60 = vmul.f32 %v1344_v55, %v994_v59 }
 0x761   : > { %v999_v62 = vsel %vm998_vm10, %v1344_v55, %v995_v60 }
 0x762   : > { %v1000_v63 = vmul.f32 %v999_v62, %v965_v47 }
 0x764   : > { %v1002_v1 = vmul.f32 %v1328_v61, %v1000_v63 }
 0x766   : > { %v1004_v2 = vadd.f32 %v1329_v0, %v1002_v1 }
 0x768   : > { %v1006_v3 = vmul.f32 0.70710677, %v1004_v2  ;;  %v1005_v39 = vmul.f32 0.5, %v1004_v2 }
 0x76a   : > { %v1007_v4 = vmul.f32 %v1006_v3, %v1006_v3 }
 0x76c   : > { %v1008_v5 = vmin.f32 %v1007_v4, 16.0 }
 0x76e   : > { %v1009_v6 = vmul.f32 2.1237322e-06, %v1008_v5  ;;  %v1020_v7 = vmul.f32 3.8918573e-05, %v1008_v5 }
 0x770   : > { %v1010_v8 = vadd.f32 0.00028619796, %v1009_v6  ;;  %v1021_v9 = vadd.f32 0.001143296, %v1020_v7 }
 0x772   : > { %v1011_v10 = vmul.f32 %v1010_v8, %v1008_v5  ;;  %v1022_v11 = vmul.f32 %v1021_v9, %v1008_v5 }
 0x774   : > { %v1023_v12 = vadd.f32 0.014752088, %v1022_v11  ;;  %v1012_v13 = vadd.f32 0.0036580483, %v1011_v10 }
 0x776   : > { %v1024_v14 = vmul.f32 %v1023_v12, %v1008_v5  ;;  %v1013_v16 = vmul.f32 %v1012_v13, %v1008_v5 }
 0x778   : > { %v1025_v15 = vadd.f32 0.112945676, %v1024_v14  ;;  %v1014_v19 = vadd.f32 0.05243302, %v1013_v16 }
 0x77a   : > { %v1026_v17 = vmul.f32 %v1025_v15, %v1008_v5  ;;  %v1015_v22 = vmul.f32 %v1014_v19, %v1008_v5 }
 0x77c   : > { %v1027_v18 = vadd.f32 0.4994258, %v1026_v17  ;;  %v1016_v23 = vadd.f32 0.18741608, %v1015_v22 }
 0x77e   : > { %v1028_v20 = vmul.f32 %v1027_v18, %v1008_v5  ;;  %v1017_v25 = vmul.f32 %v1016_v23, %v1008_v5 }
 0x780   : > { %v1029_v21 = vadd.f32 1.0, %v1028_v20  ;;  %v1018_v29 = vadd.f32 1.1283791, %v1017_v25 }
 0x782   : > { %1345 = vrcp.f32 %v1029_v21  ;;  %v1041_v28 = vand.u32 2147483648, %v1029_v21  ;;  %v1039_v31 = vand.u32 2147483647, %v1029_v21  ;;  %vm1035_vm12 = vweird.f32 %v1029_v21 }
 0x783   : > { %v1019_v34 = vmul.f32 %v1018_v29, %v1006_v3 }
 0x784   : > { %v1042_v33 = vor.u32 1.1754944e-38, %v1041_v28  ;;  %vm1040_vm14 = vcmp.eq.f32.partialorder %v1039_v31, 8.507059e+37 }
 0x788   : > { %v1346_v24 = vpop.eup %1345 }
 0x789   : > { %v1031_v26 = vmul.f32 %v1346_v24, %v1029_v21  ;;  %vm1036_vm11 = vweird.f32 %v1346_v24 }
 0x78a   : > { %vm1037_vm13 = vmor %vm1035_vm12, %vm1036_vm11 }
 0x78b   : > { %v1032_v27 = vsub.f32 1.0, %v1031_v26 }
 0x78d   : > { %v1033_v30 = vmul.f32 %v1346_v24, %v1032_v27 }
 0x78f   : > { %v1034_v32 = vadd.f32 %v1346_v24, %v1033_v30 }
 0x791   : > { %v1038_v35 = vsel %vm1037_vm13, %v1346_v24, %v1034_v32 }
 0x792   : > { %v1043_v36 = vsel %vm1040_vm14, %v1042_v33, %v1038_v35 }
 0x793   : > { %v1044_v37 = vmul.f32 %v1043_v36, %v1019_v34 }
 0x795   : > { %v1222_v38 = vclamps-f32 %v1044_v37, 1.0 }
 0x797   : > { %v1047_v40 = vadd.f32 1.0, %v1222_v38 }
 0x799   : > { %v1048_v41 = vmul.f32 %v1047_v40, %v1005_v39 }
 0x79b   : > { %1223 = vmatmul.msk.f32.vlgmr.msra.gmra.mxu2 %vm941_vm7, %v1048_v41 }
 0x81e   : > { %v1074_v43 = vpop.f32.mrf.mxu2 }
 0x81f   : > { %v1075_v44 = vadd.f32 %v1330_v42, %v1074_v43 }
 0x821   : > { %1078 = vst.msk [vmem:[%s459_s1] sm:$0xff] %vm1077_vm15, %v1075_v44 }
 0x822 PF: > { %p23_p3 = scmp.ge.s32.totalorder %s1701_s30, 4   ;;  %s1932_s13 = smov %s1565_s14 }
 0x823   : > { %s1933_s14 = smov %s1569_s15  ;;  %s1934_s15 = smov %s1712_s28 }
 0x824   : > { %s1935_s16 = smov %s1701_s30  ;;  %25 = sbr.rel (!%p23_p3) target bundleno = 8 (0x8), region = 120 }
 0x829   :  { %1098 = vsyncpa [#allocation3], 1 }
 0x82a   :  { %1100 = vsyncpa [#allocation3 + $0x1], 1 }
 0x82b   :  { %1101 = vsyncpa [#allocation5], 1 }
 0x82c   :  { %1102 = vsyncpa [#allocation8], 1 }
 0x82d   :  { %1103 = vsyncpa [#allocation11], 1 }

</bundles_post_ra>
